<compile_context>
chip_gen: v7x
topology: tpu7x:2x2x1
jax: 0.10.0
libtpu: 0.0.40
codegen_flags: <defaults>
</compile_context>

<pallas_src>
import functools

import jax
import jax.numpy as jnp
from jax.experimental import pallas as pl
from jax.experimental.pallas import tpu as pltpu

_STD = 0.3
_TWO_PI = 6.283185307179586
_LANES = 512          # lane-dense slab width (multiple of 128)
_MAX_TILE_ROWS = 512  # 512 x 512 f32 = 1 MiB per block (x2 bufs x in/out ~ 4 MiB VMEM)


def _fmix32(h):
    """murmur3 32-bit finalizer (good avalanche) on uint32 arrays."""
    h = h ^ (h >> 16)
    h = h * jnp.uint32(0x85EBCA6B)
    h = h ^ (h >> 13)
    h = h * jnp.uint32(0xC2B2AE35)
    h = h ^ (h >> 16)
    return h


def _noise_kernel(seed_ref, x_ref, o_ref, *, std):
    """o = x + std * N(0, 1), noise generated in-kernel from a counter hash."""
    tr, lanes = x_ref.shape
    half = lanes // 2  # one Box-Muller pair fills two lanes
    pid = pl.program_id(0)

    # Unique counter per Box-Muller pair across the whole array (tile-aware,
    # so different grid steps produce independent streams).
    row = jax.lax.broadcasted_iota(jnp.int32, (tr, half), 0)
    col = jax.lax.broadcasted_iota(jnp.int32, (tr, half), 1)
    local = row * half + col
    ctr = (pid * (tr * half) + local).astype(jnp.uint32)

    # Mix in the scalar seed (SMEM) and hash into two 32-bit streams.
    key = seed_ref[0].astype(jnp.uint32) * jnp.uint32(0x9E3779B9)
    h = ctr + key
    b1 = _fmix32(h)
    b2 = _fmix32(h ^ jnp.uint32(0x68BC21EB))

    # Top-24-bit uniforms; u1 is strictly in (0, 1) so log() is safe.
    inv24 = jnp.float32(1.0 / (1 << 24))
    u1 = ((b1 >> 8).astype(jnp.int32).astype(jnp.float32) + jnp.float32(0.5)) * inv24
    u2 = (b2 >> 8).astype(jnp.int32).astype(jnp.float32) * inv24

    # Box-Muller: one (log, sqrt) pair yields TWO normals (cos and sin branch).
    r = jnp.sqrt(jnp.float32(-2.0) * jnp.log(u1))
    theta = jnp.float32(_TWO_PI) * u2
    # Lane-dim concat at a 128-aligned offset (half = 256) -> cheap, no shuffles.
    z = jnp.concatenate([r * jnp.cos(theta), r * jnp.sin(theta)], axis=-1)

    o_ref[...] = (x_ref[...].astype(jnp.float32)
                  + jnp.float32(std) * z).astype(o_ref.dtype)


def noise(x, seed, std=_STD):
    """Returns x + N(0, std^2) elementwise noise, same shape/dtype as x."""
    orig_shape, orig_dtype = x.shape, x.dtype
    total = x.size

    # Flatten to a lane-dense (rows, 512) slab; pad tail so lanes divide evenly.
    rows = pl.cdiv(total, _LANES)
    padded = rows * _LANES
    x_flat = x.reshape(-1)
    if padded != total:
        x_flat = jnp.pad(x_flat, (0, padded - total))
    x2 = x_flat.reshape(rows, _LANES)

    # Tile rows: full extent if small (valid block even if not a multiple of 8),
    # otherwise 512-row tiles (~1 MiB/block) for pipelining on all generations.
    tile_rows = rows if rows <= _MAX_TILE_ROWS else _MAX_TILE_ROWS
    grid = (pl.cdiv(rows, tile_rows),)

    seed_arr = jnp.asarray([seed], dtype=jnp.int32)
    kernel = functools.partial(_noise_kernel, std=float(std))

    out2 = pl.pallas_call(
        kernel,
        out_shape=jax.ShapeDtypeStruct(x2.shape, x2.dtype),
        grid_spec=pltpu.PrefetchScalarGridSpec(
            num_scalar_prefetch=1,          # seed lands in SMEM
            grid=grid,
            in_specs=[pl.BlockSpec((tile_rows, _LANES), lambda i, seed: (i, 0))],
            out_specs=pl.BlockSpec((tile_rows, _LANES), lambda i, seed: (i, 0)),
        ),
        compiler_params=pltpu.CompilerParams(
            # Embarrassingly parallel elementwise op: shard grid across cores.
            dimension_semantics=("parallel",),
        ),
    )(seed_arr, x2)

    out_flat = out2.reshape(-1)
    if padded != total:
        out_flat = out_flat[:total]
    return out_flat.reshape(orig_shape).astype(orig_dtype)


if __name__ == "__main__":
    key = jax.random.PRNGKey(0)
    x = jax.random.normal(key, (2, 4, 16, 16), dtype=jnp.float32)

    y = noise(x, seed=1234, std=_STD)
    y = jax.block_until_ready(y)

    assert y.shape == x.shape and y.dtype == x.dtype
    # Sanity: added noise should have ~zero mean and ~0.3 std.
    delta = y - x
    m = float(jnp.mean(delta))
    s = float(jnp.std(delta))
    assert abs(m) < 0.1, m
    assert 0.15 < s < 0.45, s

    print("KERNEL_OK")
</pallas_src>

<mosaic_0001>
module attributes {stable_mosaic.version = 11 : i64} {
  func.func @_noise_kernel(%arg0: i32, %arg1: memref<1xi32, #tpu.memory_space<smem>>, %arg2: memref<4x512xf32, #tpu.memory_space<vmem>>, %arg3: memref<4x512xf32, #tpu.memory_space<vmem>>) attributes {dimension_semantics = [#tpu.dimension_semantics<parallel>], iteration_bounds = array<i64: 1>, scalar_prefetch = 1 : i64, scratch_operands = 0 : i64, tpu.core_type = #tpu.core_type<tc>, window_params = [{transform_indices = @transform_0, window_bounds = array<i64: 4, 512>}, {transform_indices = @transform_1, window_bounds = array<i64: 4, 512>}]} {
    %0 = tpu.iota {dimensions = array<i32: 0>} : vector<4x256xi32>
    %1 = tpu.iota {dimensions = array<i32: 1>} : vector<4x256xi32>
    %c256_i32 = arith.constant 256 : i32
    %2 = vector.broadcast %c256_i32 : i32 to vector<4x256xi32>
    %3 = arith.muli %0, %2 : vector<4x256xi32>
    %4 = arith.addi %3, %1 : vector<4x256xi32>
    %c1024_i32 = arith.constant 1024 : i32
    %5 = arith.muli %arg0, %c1024_i32 : i32
    %6 = vector.broadcast %5 : i32 to vector<4x256xi32>
    %7 = arith.addi %6, %4 : vector<4x256xi32>
    %c0 = arith.constant 0 : index
    %8 = memref.load %arg1[%c0] : memref<1xi32, #tpu.memory_space<smem>>
    %c-1640531527_i32 = arith.constant -1640531527 : i32
    %9 = arith.muli %8, %c-1640531527_i32 : i32
    %10 = vector.broadcast %9 : i32 to vector<4x256xi32>
    %11 = arith.addi %7, %10 : vector<4x256xi32>
    %c16_i32 = arith.constant 16 : i32
    %12 = vector.broadcast %c16_i32 : i32 to vector<4x256xi32>
    %13 = arith.shrui %11, %12 : vector<4x256xi32>
    %14 = arith.xori %11, %13 : vector<4x256xi32>
    %c-2048144789_i32 = arith.constant -2048144789 : i32
    %15 = vector.broadcast %c-2048144789_i32 : i32 to vector<4x256xi32>
    %16 = arith.muli %14, %15 : vector<4x256xi32>
    %c13_i32 = arith.constant 13 : i32
    %17 = vector.broadcast %c13_i32 : i32 to vector<4x256xi32>
    %18 = arith.shrui %16, %17 : vector<4x256xi32>
    %19 = arith.xori %16, %18 : vector<4x256xi32>
    %c-1028477387_i32 = arith.constant -1028477387 : i32
    %20 = vector.broadcast %c-1028477387_i32 : i32 to vector<4x256xi32>
    %21 = arith.muli %19, %20 : vector<4x256xi32>
    %c16_i32_0 = arith.constant 16 : i32
    %22 = vector.broadcast %c16_i32_0 : i32 to vector<4x256xi32>
    %23 = arith.shrui %21, %22 : vector<4x256xi32>
    %24 = arith.xori %21, %23 : vector<4x256xi32>
    %c1757159915_i32 = arith.constant 1757159915 : i32
    %25 = vector.broadcast %c1757159915_i32 : i32 to vector<4x256xi32>
    %26 = arith.xori %11, %25 : vector<4x256xi32>
    %c16_i32_1 = arith.constant 16 : i32
    %27 = vector.broadcast %c16_i32_1 : i32 to vector<4x256xi32>
    %28 = arith.shrui %26, %27 : vector<4x256xi32>
    %29 = arith.xori %26, %28 : vector<4x256xi32>
    %c-2048144789_i32_2 = arith.constant -2048144789 : i32
    %30 = vector.broadcast %c-2048144789_i32_2 : i32 to vector<4x256xi32>
    %31 = arith.muli %29, %30 : vector<4x256xi32>
    %c13_i32_3 = arith.constant 13 : i32
    %32 = vector.broadcast %c13_i32_3 : i32 to vector<4x256xi32>
    %33 = arith.shrui %31, %32 : vector<4x256xi32>
    %34 = arith.xori %31, %33 : vector<4x256xi32>
    %c-1028477387_i32_4 = arith.constant -1028477387 : i32
    %35 = vector.broadcast %c-1028477387_i32_4 : i32 to vector<4x256xi32>
    %36 = arith.muli %34, %35 : vector<4x256xi32>
    %c16_i32_5 = arith.constant 16 : i32
    %37 = vector.broadcast %c16_i32_5 : i32 to vector<4x256xi32>
    %38 = arith.shrui %36, %37 : vector<4x256xi32>
    %39 = arith.xori %36, %38 : vector<4x256xi32>
    %c8_i32 = arith.constant 8 : i32
    %40 = vector.broadcast %c8_i32 : i32 to vector<4x256xi32>
    %41 = arith.shrui %24, %40 : vector<4x256xi32>
    %42 = arith.sitofp %41 : vector<4x256xi32> to vector<4x256xf32>
    %cst = arith.constant 5.000000e-01 : f32
    %43 = vector.broadcast %cst : f32 to vector<4x256xf32>
    %44 = arith.addf %42, %43 : vector<4x256xf32>
    %cst_6 = arith.constant 5.96046448E-8 : f32
    %45 = vector.broadcast %cst_6 : f32 to vector<4x256xf32>
    %46 = arith.mulf %44, %45 : vector<4x256xf32>
    %c8_i32_7 = arith.constant 8 : i32
    %47 = vector.broadcast %c8_i32_7 : i32 to vector<4x256xi32>
    %48 = arith.shrui %39, %47 : vector<4x256xi32>
    %49 = arith.sitofp %48 : vector<4x256xi32> to vector<4x256xf32>
    %cst_8 = arith.constant 5.96046448E-8 : f32
    %50 = vector.broadcast %cst_8 : f32 to vector<4x256xf32>
    %51 = arith.mulf %49, %50 : vector<4x256xf32>
    %52 = math.log %46 : vector<4x256xf32>
    %cst_9 = arith.constant -2.000000e+00 : f32
    %53 = vector.broadcast %cst_9 : f32 to vector<4x256xf32>
    %54 = arith.mulf %53, %52 : vector<4x256xf32>
    %55 = math.sqrt %54 : vector<4x256xf32>
    %cst_10 = arith.constant 6.28318548 : f32
    %56 = vector.broadcast %cst_10 : f32 to vector<4x256xf32>
    %57 = arith.mulf %56, %51 : vector<4x256xf32>
    %58 = math.cos %57 : vector<4x256xf32>
    %59 = arith.mulf %55, %58 : vector<4x256xf32>
    %60 = math.sin %57 : vector<4x256xf32>
    %61 = arith.mulf %55, %60 : vector<4x256xf32>
    %62 = tpu.concatenate %59, %61 in 1 : vector<4x256xf32>, vector<4x256xf32> -> vector<4x512xf32>
    %c0_11 = arith.constant 0 : index
    %c0_12 = arith.constant 0 : index
    %63 = vector.load %arg2[%c0_11, %c0_12] : memref<4x512xf32, #tpu.memory_space<vmem>>, vector<4x512xf32>
    %cst_13 = arith.constant 3.000000e-01 : f32
    %64 = vector.broadcast %cst_13 : f32 to vector<4x512xf32>
    %65 = arith.mulf %64, %62 : vector<4x512xf32>
    %66 = arith.addf %63, %65 : vector<4x512xf32>
    %c0_14 = arith.constant 0 : index
    %c0_15 = arith.constant 0 : index
    %67 = vector.load %arg3[%c0_14, %c0_15] : memref<4x512xf32, #tpu.memory_space<vmem>>, vector<4x512xf32>
    tpu.vector_store %arg3[%c0_14, %c0_15], %66 {strides = array<i32>} : memref<4x512xf32, #tpu.memory_space<vmem>>, vector<4x512xf32>,
    return
  }
  func.func @transform_0(%arg0: i32, %arg1: memref<1xi32, #tpu.memory_space<smem>>) -> (i32, i32) {
    %c0_i32 = arith.constant 0 : i32
    %c0_i32_0 = arith.constant 0 : i32
    return %arg0, %c0_i32 : i32, i32
  }
  func.func @transform_1(%arg0: i32, %arg1: memref<1xi32, #tpu.memory_space<smem>>) -> (i32, i32) {
    %c0_i32 = arith.constant 0 : i32
    %c0_i32_0 = arith.constant 0 : i32
    return %arg0, %c0_i32 : i32, i32
  }
}

</mosaic_0001>

<bundles_post_ra>
// kernel: tpu_custom_call.1
= control target key start
LH: loop header
LB: loop body
LE: loop exit
PB: predicated region body
PF: predicated region fallthrough
CT: control target
= control target key end

     0   :  { %8 = vsyncpa [#allocation5], 0  ;;  %s801_s0 = inlined_call_operand.<no memory space> [shape: s32[1], index: 0, kind: input, shape index: {}]   ;;  %s802_s1 = inlined_call_operand.hbm [shape: f32[4,512], index: 1, kind: input, shape index: {}]   ;;  %s803_s2 = inlined_call_operand.hbm [shape: f32[4,512], index: 2, kind: output, shape index: {}]  }
   0x1   :  { %9 = vsyncpa [#allocation6], 0  ;;  %s657_s9 = smov [#allocation4]   ;;  %s609_s13 = scalar_lea.hbm %s802_s1, 256 }
   0x2   :  { %s16_s10 = sshll.u32 %s657_s9, 4  ;;  %p610_p0 = scmp.ne.s32.totalorder %s802_s1, %s609_s13  ;;  %s17_s10 = int_to_ptr.vmem [resolvable:$true] %s16_s10 }
   0x3   :  { %p613_p1 = scmp.lt.u32.totalorder %s609_s13, %s802_s1 }
   0x5   :  { %p615_p2 = pnand %p613_p1, %p610_p0 }
   0x7   :  { %618 = shalt.err (!%p615_p2)
}
   0x8   :  { %s619_s18 = scalar_lea.vmem %s17_s10, 256  ;;  %p624_p4 = scmp.lt.s32.totalorder %s17_s10, %s17_s10 }
   0x9   :  { %p620_p3 = scmp.ne.s32.totalorder %s17_s10, %s619_s18  ;;  %p625_p5 = scmp.lt.s32.totalorder %s619_s18, %s619_s18 }
   0xb   :  { %p626_p6 = por %p625_p5, %p624_p4 }
   0xd   :  { %p627_p7 = pnand %p626_p6, %p620_p3 }
   0xf   :  { %630 = shalt.err (!%p627_p7)
}
  0x10   :  { %19 = dma.hbm_to_vmem [thread:$0]  %s802_s1, 256, %s17_s10, [#allocation5]  }
  0x11   :  { %653 = dma.done.wait [#allocation5], 256  }
  0x12   :  { %654 = vsyncadd [#allocation5], 4294967040  ;;  %v23_v0 = vlaneseq  ;;  %s36_s23 = smul.u32 2654435769, %s801_s0  ;;  %v658_v63 = vmov 683565275  }
  0x13   :  { %s664_s0 = smov [#allocation7]  }
  0x14   :  { %v24_v1 = vshrl.u32 %v23_v0, 7  ;;  %v26_v2 = vand.u32 127, %v23_v0  ;;  %v37_v5 = vstv %s36_s23  ;;  %s552_s1 = sshll.u32 %s664_s0, 4  ;;  %s553_s1 = int_to_ptr.vmem [resolvable:$true] %s552_s1 }
  0x15   :  { %s631_s24 = scalar_lea.vmem %s553_s1, 256  ;;  %p636_p9 = scmp.lt.s32.totalorder %s553_s1, %s553_s1 }
  0x16   :  { %v27_v3 = vadd.s32 128, %v26_v2  ;;  %v28_v4 = vmul.u32 256, %v24_v1  ;;  %v659_v1 = vmov 2475754826   ;;  %p632_p8 = scmp.ne.s32.totalorder %s553_s1, %s631_s24  ;;  %p637_p10 = scmp.lt.s32.totalorder %s631_s24, %s631_s24 }
  0x18   :  { %v29_v6 = vadd.s32 %v28_v4, %v26_v2  ;;  %v30_v7 = vadd.s32 %v28_v4, %v27_v3  ;;  %p638_p11 = por %p637_p10, %p636_p9 }
  0x1a   :  { %v38_v8 = vadd.s32 %v37_v5, %v29_v6  ;;  %v39_v9 = vadd.s32 %v37_v5, %v30_v7  ;;  %p639_p12 = pnand %p638_p11, %p632_p8 }
  0x1c   :  { %v56_v10 = vxor.u32 1757159915, %v38_v8  ;;  %v57_v11 = vxor.u32 1757159915, %v39_v9  ;;  %v40_v26 = vshrl.u32 %v38_v8, 16  ;;  %v41_v36 = vshrl.u32 %v39_v9, 16 }
  0x1e   :  { %v58_v12 = vshrl.u32 %v56_v10, 16  ;;  %v59_v13 = vshrl.u32 %v57_v11, 16  ;;  %v42_v31 = vxor.u32 %v40_v26, %v38_v8  ;;  %v43_v41 = vxor.u32 %v41_v36, %v39_v9 }
  0x1f   :  { %v660_v9 = vmov 2131351028  }
  0x20   :  { %v60_v14 = vxor.u32 %v58_v12, %v56_v10  ;;  %v61_v15 = vxor.u32 %v59_v13, %v57_v11  ;;  %v44_v37 = vmul.u32 2246822507, %v42_v31  ;;  %v45_v48 = vmul.u32 2246822507, %v43_v41 }
  0x21   :  { %v661_v12 = vmov 2102212464  }
  0x22   :  { %v62_v16 = vmul.u32 2246822507, %v60_v14  ;;  %v63_v17 = vmul.u32 2246822507, %v61_v15  ;;  %v46_v43 = vshrl.u32 %v44_v37, 13  ;;  %v47_v54 = vshrl.u32 %v45_v48, 13 }
  0x23   :  { %v662_v15 = vmov 920167782  }
  0x24   :  { %v64_v18 = vshrl.u32 %v62_v16, 13  ;;  %v65_v19 = vshrl.u32 %v63_v17, 13  ;;  %v48_v50 = vxor.u32 %v46_v43, %v44_v37  ;;  %v704_v61 = vxor.u32 %v47_v54, %v45_v48 }
  0x26   :  { %v66_v20 = vxor.u32 %v64_v18, %v62_v16  ;;  %v67_v21 = vxor.u32 %v65_v19, %v63_v17  ;;  %v50_v56 = vmul.u32 3266489909, %v48_v50  ;;  %v51_v31 = vmul.u32 3266489909, %v704_v61 }
  0x28   :  { %v68_v22 = vmul.u32 3266489909, %v66_v20  ;;  %v69_v23 = vmul.u32 3266489909, %v67_v21  ;;  %v52_v3 = vshrl.u32 %v50_v56, 16  ;;  %v53_v50 = vshrl.u32 %v51_v31, 16 }
  0x29   :  { %v663_v20 = vmov 1326507024  }
  0x2a   :  { %v70_v24 = vshrl.u32 %v68_v22, 16  ;;  %v71_v25 = vshrl.u32 %v69_v23, 16 }
  0x2c   :  { %v72_v27 = vxor.u32 %v70_v24, %v68_v22  ;;  %v73_v28 = vxor.u32 %v71_v25, %v69_v23 }
  0x2e   :  { %v82_v29 = vshrl.u32 %v72_v27, 8  ;;  %v83_v30 = vshrl.u32 %v73_v28, 8 }
  0x30   :  { %v84_v32 = vcvt.s32.f32 %v82_v29  ;;  %v85_v33 = vcvt.s32.f32 %v83_v30 }
  0x32   :  { %v86_v34 = vmul.f32 5.9604645e-08, %v84_v32  ;;  %v87_v35 = vmul.f32 5.9604645e-08, %v85_v33 }
  0x34   :  { %v695_v38 = vmul.f32 6.2831855, %v86_v34  ;;  %v697_v39 = vmul.f32 6.2831855, %v87_v35  ;;  %v54_v35 = vxor.u32 %v52_v3, %v50_v56 }
  0x36   :  { %v113_v40 = vand.u32 2139095040, %v695_v38  ;;  %v216_v42 = vand.u32 2139095040, %v697_v39  ;;  %v110_v44 = vand.u32 2147483647, %v695_v38  ;;  %v213_v5 = vand.u32 2147483647, %v697_v39 }
  0x37   :  { %vm112_vm13 = vcmp.lt.s32.totalorder %v695_v38, 0 }
  0x38   :  { %v114_v45 = vshrl.u32 %v113_v40, 23  ;;  %v217_v46 = vshrl.u32 %v216_v42, 23  ;;  %v117_v51 = vand.u32 8388607, %v110_v44  ;;  %v220_v40 = vand.u32 8388607, %v213_v5 }
  0x39   :  { %vm757_vm14 = vcmp.le.f32.partialorder %v110_v44, 0.7853982 }
  0x3a   :  { %v561_v47 = vadd.s32 4294967169, %v114_v45  ;;  %v565_v49 = vadd.s32 4294967169, %v217_v46  ;;  %v118_v57 = vor.u32 8388608, %v117_v51 }
  0x3c   :  { %v120_v52 = vadd.s32 1, %v561_v47  ;;  %v223_v53 = vadd.s32 1, %v565_v49  ;;  %v706_v4 = vshll.u32 %v118_v57, 8 }
  0x3e   :  { %vm121_vm0 = vcmp.gt.s32.totalorder %v120_v52, 0  ;;  %vm224_vm1 = vcmp.gt.s32.totalorder %v223_v53, 0 }
  0x3f   :  { %v122_v55 = vsel %vm121_vm0, %v120_v52, 0  ;;  %v225_v59 = vsel %vm224_vm1, %v223_v53, 0  ;;  %vm215_vm0 = vcmp.lt.s32.totalorder %v697_v39, 0  ;;  %vm214_vm1 = vcmp.le.f32.partialorder %v213_v5, 0.7853982 }
  0x40   :  { %v124_v58 = vand.u32 31, %v122_v55  ;;  %v123_v62 = vshrl.u32 %v122_v55, 5  ;;  %v709_v6 = vand.u32 31, %v225_v59  ;;  %v221_v55 = vor.u32 8388608, %v220_v40 }
  0x41   :  { %v226_v56 = vshrl.u32 %v225_v59, 5 }
  0x42   :  { %v125_v60 = vsub.s32 32, %v124_v58  ;;  %v127_v0 = vshll.u32 %v658_v63, %v124_v58  ;;  %v130_v2 = vshll.u32 %v659_v1, %v124_v58  ;;  %v133_v11 = vshll.u32 %v660_v9, %v124_v58 }
  0x43   :  { %v136_v14 = vshll.u32 %v661_v12, %v124_v58  ;;  %v139_v17 = vshll.u32 %v662_v15, %v124_v58  ;;  %vm142_vm2 = vcmp.lt.s32.totalorder %v123_v62, 1  ;;  %vm143_vm3 = vcmp.lt.s32.totalorder %v123_v62, 2 }
  0x44   :  { %v126_v7 = vshrl.u32 %v658_v63, %v125_v60  ;;  %v128_v8 = vshrl.u32 %v659_v1, %v125_v60  ;;  %v131_v10 = vshrl.u32 %v660_v9, %v125_v60  ;;  %v134_v13 = vshrl.u32 %v661_v12, %v125_v60 }
  0x45   :  { %v137_v16 = vshrl.u32 %v662_v15, %v125_v60  ;;  %v140_v21 = vshrl.u32 %v663_v20, %v125_v60  ;;  %vm144_vm4 = vcmp.lt.s32.totalorder %v123_v62, 3  ;;  %vm145_vm5 = vcmp.lt.s32.totalorder %v123_v62, 4 }
  0x46   :  { %v129_v18 = vor.u32 %v128_v8, %v127_v0  ;;  %v132_v19 = vor.u32 %v131_v10, %v130_v2  ;;  %v135_v22 = vor.u32 %v134_v13, %v133_v11  ;;  %v228_v30 = vsub.s32 32, %v709_v6 }
  0x47   :  { %v138_v23 = vor.u32 %v137_v16, %v136_v14  ;;  %v141_v24 = vor.u32 %v140_v21, %v139_v17  ;;  %v230_v48 = vshll.u32 %v658_v63, %v709_v6  ;;  %v233_v51 = vshll.u32 %v659_v1, %v709_v6 }
  0x48   :  { %v146_v25 = vsel %vm142_vm2, %v126_v7, %v129_v18  ;;  %v150_v26 = vsel %vm142_vm2, %v129_v18, %v132_v19  ;;  %v147_v27 = vsel %vm145_vm5, %v135_v22, 2102212464  ;;  %v154_v29 = vsel %vm142_vm2, %v132_v19, %v135_v22 }
  0x49   :  { %v151_v28 = vsel %vm145_vm5, %v138_v23, 920167782  ;;  %v148_v32 = vsel %vm144_vm4, %v132_v19, %v147_v27  ;;  %v155_v34 = vsel %vm145_vm5, %v141_v24, 1326507024  ;;  %v231_v49 = vshrl.u32 %v659_v1, %v228_v30 }
  0x4a   :  { %v152_v33 = vsel %vm144_vm4, %v135_v22, %v151_v28  ;;  %v156_v37 = vsel %vm144_vm4, %v138_v23, %v155_v34  ;;  %v149_v41 = vsel %vm143_vm3, %v146_v25, %v148_v32  ;;  %v234_v52 = vshrl.u32 %v660_v9, %v228_v30 }
  0x4b   :  { %v153_v36 = vsel %vm143_vm3, %v150_v26, %v152_v33  ;;  %v157_v42 = vsel %vm143_vm3, %v154_v29, %v156_v37  ;;  %v236_v53 = vshll.u32 %v660_v9, %v709_v6  ;;  %v165_v54 = vmul.u32 %v706_v4, %v149_v41 }
  0x4c   :  { %v719_v43 = vmul.u32.u64.low %v706_v4, %v153_v36  ;;  %v720_v45 = vmul.u32.u64.high %v706_v4, %v153_v36, %v719_v43  ;;  %v724_v46 = vmul.u32.u64.low %v706_v4, %v157_v42  ;;  %v725_v47 = vmul.u32.u64.high %v706_v4, %v157_v42, %v724_v46 }
  0x4d   :  { %v237_v57 = vshrl.u32 %v661_v12, %v228_v30  ;;  %v74_v58 = vshrl.u32 %v54_v35, 8  ;;  %v229_v61 = vshrl.u32 %v658_v63, %v228_v30  ;;  %v239_v62 = vshll.u32 %v661_v12, %v709_v6 }
  0x4e   :  { %v168_v60 = vadd.s32 1, %v720_v45  ;;  %vm167_vm6 = vc.u32 %v725_v47, %v719_v43  ;;  %v232_v0 = vor.u32 %v231_v49, %v230_v48  ;;  %v235_v2 = vor.u32 %v234_v52, %v233_v51 }
  0x4f   :  { %v238_v1 = vor.u32 %v237_v57, %v236_v53  ;;  %v240_v7 = vshrl.u32 %v662_v15, %v228_v30  ;;  %v242_v4 = vshll.u32 %v662_v15, %v709_v6  ;;  %v243_v8 = vshrl.u32 %v663_v20, %v228_v30 }
  0x50   :  { %v169_v3 = vsel %vm167_vm6, %v168_v60, %v720_v45  ;;  %vm245_vm7 = vcmp.lt.s32.totalorder %v226_v56, 1  ;;  %vm246_vm8 = vcmp.lt.s32.totalorder %v226_v56, 2  ;;  %v261_v9 = vshll.u32 %v221_v55, 8 }
  0x51   :  { %v170_v59 = vadd.s32 %v169_v3, %v165_v54  ;;  %v241_v10 = vor.u32 %v240_v7, %v239_v62  ;;  %v244_v63 = vor.u32 %v243_v8, %v242_v4  ;;  %vm247_vm9 = vcmp.lt.s32.totalorder %v226_v56, 3 }
  0x52   :  { %vm248_vm10 = vcmp.lt.s32.totalorder %v226_v56, 4  ;;  %v253_v13 = vsel %vm245_vm7, %v232_v0, %v235_v2  ;;  %v257_v14 = vsel %vm245_vm7, %v235_v2, %v238_v1  ;;  %v55_v16 = vxor.u32 %v53_v50, %v51_v31 }
  0x53   :  { %v171_v11 = vadd.s32 536870912, %v170_v59  ;;  %v250_v12 = vsel %vm248_vm10, %v238_v1, 2102212464  ;;  %v249_v17 = vsel %vm245_vm7, %v229_v61, %v232_v0  ;;  %v254_v18 = vsel %vm248_vm10, %v241_v10, 920167782 }
  0x54   :  { %v258_v19 = vsel %vm248_vm10, %v244_v63, 1326507024  ;;  %v251_v6 = vsel %vm247_vm9, %v235_v2, %v250_v12  ;;  %v255_v15 = vsel %vm247_vm9, %v238_v1, %v254_v18  ;;  %v76_v24 = vcvt.s32.f32 %v74_v58 }
  0x55   :  { %v737_v21 = vshrl.u32 %v171_v11, 30  ;;  %v259_v20 = vsel %vm247_vm9, %v241_v10, %v258_v19  ;;  %v256_v22 = vsel %vm246_vm8, %v253_v13, %v255_v15  ;;  %v75_v28 = vshrl.u32 %v55_v16, 8 }
  0x56   :  { %v260_v23 = vsel %vm246_vm8, %v257_v14, %v259_v20  ;;  %v252_v29 = vsel %vm246_vm8, %v249_v17, %v251_v6  ;;  %v746_v30 = vmul.u32.u64.low %v261_v9, %v256_v22  ;;  %v747_v31 = vmul.u32.u64.high %v261_v9, %v256_v22, %v746_v30 }
  0x57   :  { %v173_v25 = vshll.u32 %v737_v21, 30  ;;  %v742_v26 = vmul.u32.u64.low %v261_v9, %v260_v23  ;;  %v743_v27 = vmul.u32.u64.high %v261_v9, %v260_v23, %v742_v26  ;;  %v78_v33 = vadd.f32 0.5, %v76_v24 }
  0x58   :  { %v268_v35 = vmul.u32 %v261_v9, %v252_v29  ;;  %v77_v36 = vcvt.s32.f32 %v75_v28  ;;  %v271_v37 = vadd.s32 1, %v747_v31  ;;  %v166_v51 = vadd.s32 %v719_v43, %v725_v47 }
  0x59   :  { %v174_v32 = vsub.s32 %v170_v59, %v173_v25  ;;  %vm270_vm11 = vc.u32 %v743_v27, %v746_v30  ;;  %v80_v42 = vmul.f32 5.9604645e-08, %v78_v33  ;;  %v269_v12 = vadd.s32 %v746_v30, %v743_v27 }
  0x5a   :  { %v272_v41 = vsel %vm270_vm11, %v271_v37, %v747_v31  ;;  %v79_v48 = vadd.f32 0.5, %v77_v36  ;;  %v196_v14 = vsub.s32 4, %v737_v21  ;;  %vm202_vm10 = vweird.f32 %v695_v38 }
  0x5b   :  { %v176_v34 = vsub.s32 0, %v174_v32  ;;  %v273_v46 = vadd.s32 %v272_v41, %v268_v35  ;;  %593 = vlog2.f32 %v80_v42 }
  0x5c   :  { %v81_v53 = vmul.f32 5.9604645e-08, %v79_v48  ;;  %v197_v24 = vsel %vm112_vm13, %v196_v14, %v737_v21 }
  0x5d   :  { %v562_v40 = vmin.u32 %v176_v34, %v174_v32  ;;  %v274_v50 = vadd.s32 536870912, %v273_v46  ;;  %v199_v28 = vsel %vm757_vm14, 0, %v197_v24  ;;  %v529_v24 = vld [vmem:[#allocation4 + $0x8] sm:$0xff] }
  0x5e   :  { %595 = vlog2.f32 %v81_v53  ;;  %v411_v33 = vadd.s32 3, %v199_v28  ;;  %v203_v35 = vand.u32 3, %v199_v28 }
  0x5f   :  { %v178_v45 = vclz %v562_v40  ;;  %v275_v52 = vshrl.u32 %v274_v50, 30 }
  0x60   :  { %v412_v41 = vand.u32 3, %v411_v33  ;;  %vm205_vm2 = vcmp.eq.s32.totalorder %v203_v35, 0  ;;  %vm208_vm3 = vcmp.eq.s32.totalorder %v203_v35, 2  ;;  %vm204_vm7 = vcmp.lt.s32.totalorder %v203_v35, 2 }
  0x61   :  { %v563_v49 = vadd.s32 4294967294, %v178_v45  ;;  %v276_v58 = vshll.u32 %v275_v52, 30 }
  0x62   :  { %vm414_vm4 = vcmp.eq.s32.totalorder %v412_v41, 0  ;;  %vm417_vm5 = vcmp.eq.s32.totalorder %v412_v41, 2  ;;  %vm413_vm8 = vcmp.lt.s32.totalorder %v412_v41, 2 }
  0x63   :  { %vm564_vm12 = vcmp.lt.s32.totalorder %v563_v49, 0  ;;  %v277_v62 = vsub.s32 %v273_v46, %v276_v58 }
  0x64   :  { %v181_v54 = vsel %vm564_vm12, 0, %v563_v49 }
  0x65   :  { %v182_v55 = vsub.s32 32, %v181_v54  ;;  %v183_v56 = vshll.u32 %v174_v32, %v181_v54  ;;  %v186_v57 = vsub.s32 4294967266, %v181_v54  ;;  %v279_v1 = vsub.s32 0, %v277_v62  ;;  %v594_v8 = vpop.eup %593 }
  0x66   :  { %v89_v10 = vmul.f32 0.6931472, %v594_v8  ;;  %v299_v32 = vsub.s32 4, %v275_v52 }
  0x67   :  { %v184_v60 = vshrl.u32 %v166_v51, %v182_v55  ;;  %v187_v61 = vadd.s32 127, %v186_v57  ;;  %v566_v4 = vmin.u32 %v279_v1, %v277_v62 }
  0x68   :  { %v596_v13 = vpop.eup %595  ;;  %v92_v15 = vmul.f32 -2.0, %v89_v10  ;;  %v300_v37 = vsel %vm215_vm0, %v299_v32, %v275_v52 }
  0x69   :  { %v185_v0 = vor.u32 %v184_v60, %v183_v56  ;;  %v188_v2 = vshll.u32 %v187_v61, 23  ;;  %v281_v47 = vclz %v566_v4  ;;  %v91_v20 = vmul.f32 0.6931472, %v596_v13 }
  0x6a   :  { %v302_v48 = vsel %vm214_vm1, 0, %v300_v37  ;;  %vm96_vm6 = vcmp.eq.f32.partialorder %v92_v15, inf  ;;  %v99_v57 = vand.u32 2147483648, %v92_v15  ;;  %vm98_vm9 = vcmp.eq.f32.partialorder %v92_v15, 0.0 }
  0x6b   :  { %v189_v3 = vor.u32 4788187, %v188_v2  ;;  %v192_v7 = vcvt.s32.f32 %v185_v0  ;;  %v567_v9 = vadd.s32 4294967294, %v281_v47  ;;  %v771_v27 = vmul.f32 -2.0, %v91_v20 }
  0x6c   :  { %v515_v53 = vadd.s32 3, %v302_v48  ;;  %v306_v60 = vand.u32 3, %v302_v48 }
  0x6d   :  { %v190_v43 = vand.u32 2147483647, %v189_v3  ;;  %vm568_vm15 = vcmp.lt.s32.totalorder %v567_v9, 0  ;;  %vm103_vm11 = vcmp.eq.f32.partialorder %v771_v27, inf  ;;  %vm105_vm12 = vcmp.eq.f32.partialorder %v771_v27, 0.0 }
  0x6e   :  { %v284_v16 = vsel %vm568_vm15, 0, %v567_v9  ;;  %v516_v61 = vand.u32 3, %v515_v53  ;;  %v106_v3 = vand.u32 2147483648, %v771_v27  ;;  %vm308_vm15 = vcmp.eq.s32.totalorder %v306_v60, 0 }
  0x6f   :  { %v193_v59 = vmul.f32 %v192_v7, %v190_v43  ;;  %v285_v18 = vsub.s32 32, %v284_v16  ;;  %v286_v19 = vshll.u32 %v277_v62, %v284_v16  ;;  %v289_v6 = vsub.s32 4294967266, %v284_v16 }
  0x71   :  { %v194_v11 = vxor.u32 2147483648, %v193_v59  ;;  %v287_v22 = vshrl.u32 %v269_v12, %v285_v18  ;;  %v290_v23 = vadd.s32 127, %v289_v6 }
  0x73   :  { %v195_v17 = vsel %vm112_vm13, %v194_v11, %v193_v59  ;;  %v288_v25 = vor.u32 %v287_v22, %v286_v19  ;;  %v291_v26 = vshll.u32 %v290_v23, 23  ;;  %vm311_vm13 = vcmp.eq.s32.totalorder %v306_v60, 2  ;;  %v528_v23 = vld [vmem:[#allocation4] sm:$0xff] }
  0x74   :  { %v198_v44 = vsel %vm757_vm14, %v695_v38, %v195_v17  ;;  %vm521_vm14 = vcmp.eq.s32.totalorder %v516_v61, 2 }
  0x75   :  { %597 = vcosq.f32 %v198_v44  ;;  %v292_v29 = vor.u32 4788187, %v291_v26  ;;  %v295_v30 = vcvt.s32.f32 %v288_v25 }
  0x76   :  { %599 = vsinq.f32 %v198_v44 }
  0x77   :  { %601 = vrsqrt.f32 %v92_v15  ;;  %v293_v31 = vand.u32 2147483647, %v292_v29 }
  0x78   :  { %603 = vrsqrt.f32 %v771_v27 }
  0x79   :  { %v296_v34 = vmul.f32 %v295_v30, %v293_v31 }
  0x7b   :  { %v297_v36 = vxor.u32 2147483648, %v296_v34 }
  0x7d   :  { %v298_v42 = vsel %vm215_vm0, %v297_v36, %v296_v34  ;;  %vm518_vm0 = vcmp.eq.s32.totalorder %v516_v61, 0 }
  0x7e   :  { %v301_v46 = vsel %vm214_vm1, %v697_v39, %v298_v42  ;;  %vm305_vm1 = vweird.f32 %v697_v39 }
  0x7f   :  { %v598_v21 = vpop.eup %597  ;;  %605 = vcosq.f32 %v301_v46 }
  0x80   :  { %v600_v40 = vpop.eup %599  ;;  %v209_v50 = vxor.u32 2147483648, %v598_v21  ;;  %607 = vsinq.f32 %v301_v46 }
  0x81   :  { %v602_v45 = vpop.eup %601  ;;  %v206_v49 = vxor.u32 2147483648, %v600_v40 }
  0x82   :  { %v95_v51 = vmul.f32 %v602_v45, %v92_v15  ;;  %v604_v5 = vpop.eup %603  ;;  %v210_v54 = vsel %vm208_vm3, %v209_v50, %v600_v40  ;;  %v419_v56 = vsel %vm417_vm5, %v209_v50, %v600_v40  ;;  %vm517_vm3 = vcmp.lt.s32.totalorder %v516_v61, 2 }
  0x83   :  { %v207_v52 = vsel %vm205_vm2, %v598_v21, %v206_v49  ;;  %v416_v55 = vsel %vm414_vm4, %v598_v21, %v206_v49  ;;  %v102_v62 = vmul.f32 %v604_v5, %v771_v27  ;;  %vm307_vm2 = vcmp.lt.s32.totalorder %v306_v60, 2 }
  0x84   :  { %v97_v58 = vsel %vm96_vm6, %v92_v15, %v95_v51  ;;  %v211_v0 = vsel %vm204_vm7, %v207_v52, %v210_v54  ;;  %v420_v2 = vsel %vm413_vm8, %v416_v55, %v419_v56 }
  0x85   :  { %v100_v1 = vsel %vm98_vm9, %v99_v57, %v97_v58  ;;  %v212_v4 = vsel %vm202_vm10, nan, %v211_v0  ;;  %v421_v8 = vsel %vm202_vm10, nan, %v420_v2  ;;  %v104_v47 = vsel %vm103_vm11, %v771_v27, %v102_v62 }
  0x86   :  { %v316_v10 = vmul.f32 %v212_v4, %v100_v1  ;;  %v526_v11 = vmul.f32 %v421_v8, %v100_v1  ;;  %v107_v12 = vsel %vm105_vm12, %v106_v3, %v104_v47 }
  0x88   :  { %v530_v44 = vmul.f32 0.3, %v316_v10  ;;  %v532_v39 = vmul.f32 0.3, %v526_v11 }
  0x89   :  { %v606_v7 = vpop.eup %605 }
  0x8a   :  { %v608_v43 = vpop.eup %607  ;;  %v312_v59 = vxor.u32 2147483648, %v606_v7 }
  0x8b   :  { %v309_v38 = vxor.u32 2147483648, %v608_v43 }
  0x8c   :  { %v313_v9 = vsel %vm311_vm13, %v312_v59, %v608_v43  ;;  %v523_v63 = vsel %vm521_vm14, %v312_v59, %v608_v43 }
  0x8d   :  { %v310_v13 = vsel %vm308_vm15, %v606_v7, %v309_v38  ;;  %v520_v14 = vsel %vm518_vm0, %v606_v7, %v309_v38 }
  0x8e   :  { %v314_v16 = vsel %vm307_vm2, %v310_v13, %v313_v9  ;;  %v524_v17 = vsel %vm517_vm3, %v520_v14, %v523_v63 }
  0x8f   :  { %v315_v18 = vsel %vm305_vm1, nan, %v314_v16  ;;  %v525_v19 = vsel %vm305_vm1, nan, %v524_v17 }
  0x90   :  { %v317_v6 = vmul.f32 %v315_v18, %v107_v12  ;;  %v527_v15 = vmul.f32 %v525_v19, %v107_v12 }
  0x92   :  { %v531_v20 = vmul.f32 0.3, %v317_v6  ;;  %v533_v22 = vmul.f32 0.3, %v527_v15 }
  0x94   :  { %v538_v25 = vcombine.low %v530_v44, %v531_v20  ;;  %v539_v26 = vcombine.low %v532_v39, %v533_v22 }
  0x96   :  { %v542_v27 = vadd.f32 %v538_v25, %v528_v23  ;;  %v543_v28 = vadd.f32 %v539_v26, %v529_v24 }
  0x98   :  { %544 = vst [vmem:[#allocation7] sm:$0xff] %v542_v27  ;;  %545 = vst [vmem:[#allocation7 + $0x8] sm:$0xff] %v543_v28 }
  0x99   :  { %642 = shalt.err (!%p639_p12)
}
  0x9a   :  { %s643_s27 = scalar_lea.hbm %s803_s2, 256 }
  0x9b   :  { %p644_p13 = scmp.ne.s32.totalorder %s803_s2, %s643_s27  ;;  %p647_p0 = scmp.lt.u32.totalorder %s643_s27, %s803_s2 }
  0x9d   :  { %p649_p1 = pnand %p647_p0, %p644_p13 }
  0x9f   :  { %652 = shalt.err (!%p649_p1)
}
  0xa0   :  { %555 = dma.vmem_to_hbm [thread:$0]  %s553_s1, 256, %s803_s2, [#allocation6]  }
  0xa1   :  { %655 = dma.done.wait [#allocation6], 256  }
  0xa2   :  { %656 = vsyncadd [#allocation6], 4294967040 }
  0xa3   :  { %559 = vsyncpa [#allocation5], 1 }
  0xa4   :  { %560 = vsyncpa [#allocation6], 1 }

</bundles_post_ra>
